<compile_context>
chip_gen: v7x
topology: tpu7x:2x2x1
jax: 0.10.0
libtpu: 0.0.40
codegen_flags: <defaults>
</compile_context>

<pallas_src>
import functools

import jax
import jax.numpy as jnp
import numpy as np
from jax.experimental import pallas as pl
from jax.experimental.pallas import tpu as pltpu

H1 = 400
H2 = 300
LANE = 128
H1_PAD = 512            # 400 rounded up to a lane multiple
H2_PAD = 384            # 300 rounded up to a lane multiple


def _round_up(x, m):
    return ((x + m - 1) // m) * m


def _cdiv(a, b):
    return (a + b - 1) // b


def _default_max_tile_b():
    """Generation-aware batch-tile cap (VMEM scoped-default aware)."""
    try:
        kind = jax.devices()[0].device_kind.lower()
    except Exception:
        return 1024
    if any(tag in kind for tag in ("v2", "v3", "v4", "v5")):
        return 1024        # v5e etc.: 16 MiB scoped VMEM default, MXU-bound
    return 2048            # v6e / v7x: amortize ~0.35 us per grid step


def _choose_batch_tiling(batch, max_tile_b):
    """Balanced batch tiles; even tile count for mid/large B (v7x 2 TCs)."""
    if batch > 256:
        num_tiles = 2 * _cdiv(batch, 2 * max_tile_b)   # >=2 and even
    else:
        num_tiles = _cdiv(batch, max_tile_b)           # usually 1
    rows = _cdiv(batch, num_tiles)
    align = 16 if rows >= 16 else 8                    # bf16 sublane pack
    tile_b = _round_up(rows, align)
    return num_tiles, tile_b


def _pi_kernel(s_ref, w1_ref, b1_ref, w2_ref, b2_ref, w3_ref, b3_ref,
               o_ref, xpad_ref):
    # s_ref: (TILE_B, state_dim) f32.  Cast to bf16 and lane-pad to SD_PAD
    # inside the kernel (zero scratch + masked sub-lane store) so the wrapper
    # needs no separate pad/cast op and the input is read from HBM once.
    sd = s_ref.shape[1]
    xpad_ref[...] = jnp.zeros_like(xpad_ref)
    xpad_ref[:, :sd] = s_ref[...].astype(jnp.bfloat16)
    x = xpad_ref[...]

    # Hoist bias loads (broadcasts are not CSE'd by JAX).
    b1 = b1_ref[...]
    b2 = b2_ref[...]
    b3 = b3_ref[...]

    h1 = jnp.dot(x, w1_ref[...], preferred_element_type=jnp.float32) + b1
    h1 = jnp.maximum(h1, 0.0).astype(jnp.bfloat16)          # ReLU (VPU)

    h2 = jnp.dot(h1, w2_ref[...], preferred_element_type=jnp.float32) + b2
    h2 = jnp.maximum(h2, 0.0).astype(jnp.bfloat16)          # ReLU (VPU)

    o = jnp.dot(h2, w3_ref[...], preferred_element_type=jnp.float32) + b3
    o_ref[...] = jnp.tanh(o).astype(jnp.bfloat16)           # tanh (EUP), bf16 store


@functools.partial(jax.jit, static_argnames=("action_dim", "max_tile_b"))
def _pi_forward_jit(state, packed, *, action_dim, max_tile_b):
    B, state_dim = state.shape
    sd_pad = packed["w1"].shape[0]
    act_pad = packed["w3"].shape[1]

    num_tiles, tile_b = _choose_batch_tiling(B, max_tile_b)
    b_pad = num_tiles * tile_b
    if b_pad != B:                       # minimal row padding (<= ~15 per tile)
        state = jnp.pad(state, ((0, b_pad - B), (0, 0)))

    const = lambda i: (0, 0)

    param_bytes = sum(int(np.prod(packed[k].shape)) * packed[k].dtype.itemsize
                      for k in ("w1", "b1", "w2", "b2", "w3", "b3"))
    cost = pl.CostEstimate(
        flops=2 * b_pad * (sd_pad * H1_PAD + H1_PAD * H2_PAD + H2_PAD * act_pad),
        transcendentals=b_pad * act_pad,
        bytes_accessed=(b_pad * state_dim * state.dtype.itemsize
                        + b_pad * act_pad * 2 + param_bytes),
    )

    out_padded = pl.pallas_call(
        _pi_kernel,
        out_shape=jax.ShapeDtypeStruct((b_pad, act_pad), jnp.bfloat16),
        grid=(num_tiles,),
        in_specs=[
            pl.BlockSpec((tile_b, state_dim), lambda i: (i, 0)),  # state tile
            pl.BlockSpec((sd_pad, H1_PAD), const),                # w1 (resident)
            pl.BlockSpec((1, H1_PAD), const),                     # b1
            pl.BlockSpec((H1_PAD, H2_PAD), const),                # w2
            pl.BlockSpec((1, H2_PAD), const),                     # b2
            pl.BlockSpec((H2_PAD, act_pad), const),               # w3
            pl.BlockSpec((1, act_pad), const),                    # b3
        ],
        out_specs=pl.BlockSpec((tile_b, act_pad), lambda i: (i, 0)),
        scratch_shapes=[pltpu.VMEM((tile_b, sd_pad), jnp.bfloat16)],
        compiler_params=pltpu.CompilerParams(
            dimension_semantics=("parallel",),
            vmem_limit_bytes=(48 * 1024 * 1024) if tile_b >= 1024 else None),
        cost_estimate=cost,
    )(state, packed["w1"], packed["b1"], packed["w2"], packed["b2"],
      packed["w3"], packed["b3"])

    # Slice off batch/lane padding; result stays bf16 (small HBM stream).
    return out_padded[:B, :action_dim]


def pi_network_forward(state, packed, *, action_dim, max_tile_b=None):
    """state: (B, state_dim) float.  Returns (B, action_dim) bf16 actions."""
    if max_tile_b is None:
        max_tile_b = _default_max_tile_b()
    return _pi_forward_jit(state, packed, action_dim=int(action_dim),
                           max_tile_b=int(max_tile_b))


def init_pi_params(key, state_dim, action_dim):
    """f32 master params mirroring PiNetwork._init (weights stored as (in, out))."""
    ks = jax.random.split(key, 6)

    # hidden_init uses weight.size()[0] == out_features -> lim = 1/sqrt(out)
    lim1 = 1.0 / np.sqrt(H1)
    lim2 = 1.0 / np.sqrt(H2)
    w1 = jax.random.uniform(ks[0], (state_dim, H1), jnp.float32, -lim1, lim1)
    w2 = jax.random.uniform(ks[1], (H1, H2), jnp.float32, -lim2, lim2)
    w3 = jax.random.uniform(ks[2], (H2, action_dim), jnp.float32, -0.003, 0.003)

    # Biases keep PyTorch nn.Linear default: U(-1/sqrt(fan_in), 1/sqrt(fan_in)).
    bl1 = 1.0 / np.sqrt(state_dim)
    bl2 = 1.0 / np.sqrt(H1)
    bl3 = 1.0 / np.sqrt(H2)
    b1 = jax.random.uniform(ks[3], (1, H1), jnp.float32, -bl1, bl1)
    b2 = jax.random.uniform(ks[4], (1, H2), jnp.float32, -bl2, bl2)
    b3 = jax.random.uniform(ks[5], (1, action_dim), jnp.float32, -bl3, bl3)

    return {"w1": w1, "b1": b1, "w2": w2, "b2": b2, "w3": w3, "b3": b3}


def pack_params(p, state_dim, action_dim):
    """Zero-pad feature dims to lane multiples; weights -> bf16, biases -> f32."""
    sd_pad = _round_up(state_dim, LANE)
    act_pad = _round_up(action_dim, LANE)

    def pad(arr, shape, dtype):
        out = jnp.zeros(shape, dtype)
        return out.at[: arr.shape[0], : arr.shape[1]].set(arr.astype(dtype))

    return {
        "w1": pad(p["w1"], (sd_pad, H1_PAD), jnp.bfloat16),
        "b1": pad(p["b1"], (1, H1_PAD), jnp.float32),
        "w2": pad(p["w2"], (H1_PAD, H2_PAD), jnp.bfloat16),
        "b2": pad(p["b2"], (1, H2_PAD), jnp.float32),
        "w3": pad(p["w3"], (H2_PAD, act_pad), jnp.bfloat16),
        "b3": pad(p["b3"], (1, act_pad), jnp.float32),
    }


def _reference_forward_f32(state, p):
    h1 = jnp.maximum(state @ p["w1"] + p["b1"], 0.0)
    h2 = jnp.maximum(h1 @ p["w2"] + p["b2"], 0.0)
    return jnp.tanh(h2 @ p["w3"] + p["b3"])


def _reference_forward_bf16(state, packed, state_dim, action_dim):
    """Pure-JAX reference with the same padding / bf16-matmul-f32-accum scheme."""
    sd_pad = packed["w1"].shape[0]
    x = jnp.pad(state.astype(jnp.bfloat16), ((0, 0), (0, sd_pad - state_dim)))
    h1 = jnp.dot(x, packed["w1"], preferred_element_type=jnp.float32) + packed["b1"]
    h1 = jnp.maximum(h1, 0.0).astype(jnp.bfloat16)
    h2 = jnp.dot(h1, packed["w2"], preferred_element_type=jnp.float32) + packed["b2"]
    h2 = jnp.maximum(h2, 0.0).astype(jnp.bfloat16)
    o = jnp.dot(h2, packed["w3"], preferred_element_type=jnp.float32) + packed["b3"]
    return jnp.tanh(o).astype(jnp.bfloat16)[:, :action_dim]


if __name__ == "__main__":
    key = jax.random.PRNGKey(0)
    k_state, k_params = jax.random.split(key)

    batch = 8
    state_dim = 24     # inputShape[0]
    action_dim = 4     # outputShape[0]

    state = jax.random.normal(k_state, (batch, state_dim), dtype=jnp.float32)
    masters = init_pi_params(k_params, state_dim, action_dim)
    packed = pack_params(masters, state_dim, action_dim)

    out = pi_network_forward(state, packed, action_dim=action_dim)
    out = jax.block_until_ready(out)
    assert out.shape == (batch, action_dim)
    assert out.dtype == jnp.bfloat16
    out_f32 = np.asarray(out, dtype=np.float32)
    assert np.all(np.abs(out_f32) <= 1.0)  # tanh range

    # Exact-scheme reference (same padding / bf16 matmuls / bf16 output store).
    ref_bf16 = jax.block_until_ready(
        _reference_forward_bf16(state, packed, state_dim, action_dim))
    np.testing.assert_allclose(out_f32, np.asarray(ref_bf16, dtype=np.float32),
                               rtol=2e-2, atol=2e-2)

    # Full-precision reference, loose tolerance (bf16 matmul inputs/output).
    ref_f32 = jax.block_until_ready(_reference_forward_f32(state, masters))
    np.testing.assert_allclose(out_f32, np.asarray(ref_f32), rtol=5e-2, atol=5e-2)

    # TODO(synk): PiNetwork.copy() (soft target update) is a host-side parameter
    # blend, handled outside this forward kernel.
    print("KERNEL_OK")
</pallas_src>

<mosaic_0001>
module attributes {stable_mosaic.version = 11 : i64} {
  func.func @_pi_kernel(%arg0: i32, %arg1: memref<8x24xf32, #tpu.memory_space<vmem>>, %arg2: memref<128x512xbf16, #tpu.memory_space<vmem>>, %arg3: memref<1x512xf32, #tpu.memory_space<vmem>>, %arg4: memref<512x384xbf16, #tpu.memory_space<vmem>>, %arg5: memref<1x384xf32, #tpu.memory_space<vmem>>, %arg6: memref<384x128xbf16, #tpu.memory_space<vmem>>, %arg7: memref<1x128xf32, #tpu.memory_space<vmem>>, %arg8: memref<8x128xbf16, #tpu.memory_space<vmem>>, %arg9: memref<8x128xbf16, #tpu.memory_space<vmem>>) attributes {dimension_semantics = [#tpu.dimension_semantics<parallel>], iteration_bounds = array<i64: 1>, scalar_prefetch = 0 : i64, scratch_operands = 1 : i64, tpu.core_type = #tpu.core_type<tc>, window_params = [{transform_indices = @transform_0, window_bounds = array<i64: 8, 24>}, {pipeline_mode = #tpu.pipeline_mode<synchronous>, transform_indices = @transform_1, window_bounds = array<i64: 128, 512>}, {pipeline_mode = #tpu.pipeline_mode<synchronous>, transform_indices = @transform_2, window_bounds = array<i64: 1, 512>}, {pipeline_mode = #tpu.pipeline_mode<synchronous>, transform_indices = @transform_3, window_bounds = array<i64: 512, 384>}, {pipeline_mode = #tpu.pipeline_mode<synchronous>, transform_indices = @transform_4, window_bounds = array<i64: 1, 384>}, {pipeline_mode = #tpu.pipeline_mode<synchronous>, transform_indices = @transform_5, window_bounds = array<i64: 384, 128>}, {pipeline_mode = #tpu.pipeline_mode<synchronous>, transform_indices = @transform_6, window_bounds = array<i64: 1, 128>}, {transform_indices = @transform_7, window_bounds = array<i64: 8, 128>}]} {
    %cst = arith.constant 0.000000e+00 : bf16
    %0 = vector.broadcast %cst : bf16 to vector<8x128xbf16>
    %c0 = arith.constant 0 : index
    %c0_0 = arith.constant 0 : index
    %1 = vector.load %arg9[%c0, %c0_0] : memref<8x128xbf16, #tpu.memory_space<vmem>>, vector<8x128xbf16>
    tpu.vector_store %arg9[%c0, %c0_0], %0 {strides = array<i32>} : memref<8x128xbf16, #tpu.memory_space<vmem>>, vector<8x128xbf16>,
    %c0_1 = arith.constant 0 : index
    %c0_2 = arith.constant 0 : index
    %2 = vector.load %arg1[%c0_1, %c0_2] : memref<8x24xf32, #tpu.memory_space<vmem>>, vector<8x24xf32>
    %3 = arith.truncf %2 : vector<8x24xf32> to vector<8x24xbf16>
    %c0_3 = arith.constant 0 : index
    %c0_4 = arith.constant 0 : index
    %4 = vector.load %arg9[%c0_3, %c0_4] : memref<8x128xbf16, #tpu.memory_space<vmem>>, vector<8x24xbf16>
    tpu.vector_store %arg9[%c0_3, %c0_4], %3 {strides = array<i32>} : memref<8x128xbf16, #tpu.memory_space<vmem>>, vector<8x24xbf16>,
    %c0_5 = arith.constant 0 : index
    %c0_6 = arith.constant 0 : index
    %5 = vector.load %arg9[%c0_5, %c0_6] : memref<8x128xbf16, #tpu.memory_space<vmem>>, vector<8x128xbf16>
    %c0_7 = arith.constant 0 : index
    %c0_8 = arith.constant 0 : index
    %6 = vector.load %arg3[%c0_7, %c0_8] : memref<1x512xf32, #tpu.memory_space<vmem>>, vector<1x512xf32>
    %c0_9 = arith.constant 0 : index
    %c0_10 = arith.constant 0 : index
    %7 = vector.load %arg5[%c0_9, %c0_10] : memref<1x384xf32, #tpu.memory_space<vmem>>, vector<1x384xf32>
    %c0_11 = arith.constant 0 : index
    %c0_12 = arith.constant 0 : index
    %8 = vector.load %arg7[%c0_11, %c0_12] : memref<1x128xf32, #tpu.memory_space<vmem>>, vector<1x128xf32>
    %c0_13 = arith.constant 0 : index
    %c0_14 = arith.constant 0 : index
    %9 = vector.load %arg2[%c0_13, %c0_14] : memref<128x512xbf16, #tpu.memory_space<vmem>>, vector<128x512xbf16>
    %cst_15 = arith.constant dense<0.000000e+00> : vector<8x512xf32>
    %10 = tpu.matmul %5, %9, %cst_15 {dimension_numbers = #tpu.dot_dimension_numbers<[1], [0], [0], [1], [0, 0, 1, 1], [], []>} : vector<8x128xbf16>, vector<128x512xbf16>, vector<8x512xf32> -> vector<8x512xf32>
    %11 = vector.broadcast %6 : vector<1x512xf32> to vector<8x512xf32>
    %12 = arith.addf %10, %11 : vector<8x512xf32>
    %cst_16 = arith.constant 0.000000e+00 : f32
    %13 = vector.broadcast %cst_16 : f32 to vector<8x512xf32>
    %14 = arith.maximumf %12, %13 : vector<8x512xf32>
    %15 = arith.truncf %14 : vector<8x512xf32> to vector<8x512xbf16>
    %c0_17 = arith.constant 0 : index
    %c0_18 = arith.constant 0 : index
    %16 = vector.load %arg4[%c0_17, %c0_18] : memref<512x384xbf16, #tpu.memory_space<vmem>>, vector<512x384xbf16>
    %cst_19 = arith.constant dense<0.000000e+00> : vector<8x384xf32>
    %17 = tpu.matmul %15, %16, %cst_19 {dimension_numbers = #tpu.dot_dimension_numbers<[1], [0], [0], [1], [0, 0, 1, 1], [], []>} : vector<8x512xbf16>, vector<512x384xbf16>, vector<8x384xf32> -> vector<8x384xf32>
    %18 = vector.broadcast %7 : vector<1x384xf32> to vector<8x384xf32>
    %19 = arith.addf %17, %18 : vector<8x384xf32>
    %cst_20 = arith.constant 0.000000e+00 : f32
    %20 = vector.broadcast %cst_20 : f32 to vector<8x384xf32>
    %21 = arith.maximumf %19, %20 : vector<8x384xf32>
    %22 = arith.truncf %21 : vector<8x384xf32> to vector<8x384xbf16>
    %c0_21 = arith.constant 0 : index
    %c0_22 = arith.constant 0 : index
    %23 = vector.load %arg6[%c0_21, %c0_22] : memref<384x128xbf16, #tpu.memory_space<vmem>>, vector<384x128xbf16>
    %cst_23 = arith.constant dense<0.000000e+00> : vector<8x128xf32>
    %24 = tpu.matmul %22, %23, %cst_23 {dimension_numbers = #tpu.dot_dimension_numbers<[1], [0], [0], [1], [0, 0, 1, 1], [], []>} : vector<8x384xbf16>, vector<384x128xbf16>, vector<8x128xf32> -> vector<8x128xf32>
    %25 = vector.broadcast %8 : vector<1x128xf32> to vector<8x128xf32>
    %26 = arith.addf %24, %25 : vector<8x128xf32>
    %27 = math.tanh %26 : vector<8x128xf32>
    %28 = arith.truncf %27 : vector<8x128xf32> to vector<8x128xbf16>
    %c0_24 = arith.constant 0 : index
    %c0_25 = arith.constant 0 : index
    %29 = vector.load %arg8[%c0_24, %c0_25] : memref<8x128xbf16, #tpu.memory_space<vmem>>, vector<8x128xbf16>
    tpu.vector_store %arg8[%c0_24, %c0_25], %28 {strides = array<i32>} : memref<8x128xbf16, #tpu.memory_space<vmem>>, vector<8x128xbf16>,
    return
  }
  func.func @transform_0(%arg0: i32) -> (i32, i32) {
    %c0_i32 = arith.constant 0 : i32
    %c0_i32_0 = arith.constant 0 : i32
    return %arg0, %c0_i32 : i32, i32
  }
  func.func @transform_1(%arg0: i32) -> (i32, i32) {
    %c0_i32 = arith.constant 0 : i32
    %c0_i32_0 = arith.constant 0 : i32
    %c0_i32_1 = arith.constant 0 : i32
    return %c0_i32, %c0_i32_0 : i32, i32
  }
  func.func @transform_2(%arg0: i32) -> (i32, i32) {
    %c0_i32 = arith.constant 0 : i32
    %c0_i32_0 = arith.constant 0 : i32
    %c0_i32_1 = arith.constant 0 : i32
    return %c0_i32, %c0_i32_0 : i32, i32
  }
  func.func @transform_3(%arg0: i32) -> (i32, i32) {
    %c0_i32 = arith.constant 0 : i32
    %c0_i32_0 = arith.constant 0 : i32
    %c0_i32_1 = arith.constant 0 : i32
    return %c0_i32, %c0_i32_0 : i32, i32
  }
  func.func @transform_4(%arg0: i32) -> (i32, i32) {
    %c0_i32 = arith.constant 0 : i32
    %c0_i32_0 = arith.constant 0 : i32
    %c0_i32_1 = arith.constant 0 : i32
    return %c0_i32, %c0_i32_0 : i32, i32
  }
  func.func @transform_5(%arg0: i32) -> (i32, i32) {
    %c0_i32 = arith.constant 0 : i32
    %c0_i32_0 = arith.constant 0 : i32
    %c0_i32_1 = arith.constant 0 : i32
    return %c0_i32, %c0_i32_0 : i32, i32
  }
  func.func @transform_6(%arg0: i32) -> (i32, i32) {
    %c0_i32 = arith.constant 0 : i32
    %c0_i32_0 = arith.constant 0 : i32
    %c0_i32_1 = arith.constant 0 : i32
    return %c0_i32, %c0_i32_0 : i32, i32
  }
  func.func @transform_7(%arg0: i32) -> (i32, i32) {
    %c0_i32 = arith.constant 0 : i32
    %c0_i32_0 = arith.constant 0 : i32
    return %arg0, %c0_i32 : i32, i32
  }
}

</mosaic_0001>

<bundles_post_ra>
// kernel: _pi_forward_jit.1
= control target key start
LH: loop header
LB: loop body
LE: loop exit
PB: predicated region body
PF: predicated region fallthrough
CT: control target
= control target key end

     0   :  { %12 = vsyncpa [#allocation4], 0  ;;  %s2248_s0 = inlined_call_operand.hbm [shape: f32[8,24], index: 0, kind: input, shape index: {}]   ;;  %s2249_s1 = inlined_call_operand.hbm [shape: bf16[128,512], index: 1, kind: input, shape index: {}]   ;;  %s2250_s2 = inlined_call_operand.hbm [shape: f32[1,512], index: 2, kind: input, shape index: {}]   ;;  %s2251_s3 = inlined_call_operand.hbm [shape: bf16[512,384], index: 3, kind: input, shape index: {}]   ;;  %s2252_s4 = inlined_call_operand.vmem [shape: f32[1,384], index: 4, kind: input, shape index: {}]   ;;  %s2253_s5 = inlined_call_operand.hbm [shape: bf16[384,128], index: 5, kind: input, shape index: {}]   ;;  %s2254_s6 = inlined_call_operand.vmem [shape: f32[1,128], index: 6, kind: input, shape index: {}]   ;;  %s2255_s7 = inlined_call_operand.vmem [shape: bf16[8,128], index: 7, kind: output, shape index: {}]  }
   0x1   :  { %13 = vsyncpa [#allocation6], 0 }
   0x2   :  { %14 = vsyncpa [#allocation9], 0  ;;  %s2101_s24 = smov [#allocation5]   ;;  %s1985_s28 = scalar_lea.hbm %s2249_s1, 4096 }
   0x3   :  { %s30_s25 = sshll.u32 %s2101_s24, 4  ;;  %p1986_p0 = scmp.ne.s32.totalorder %s2249_s1, %s1985_s28  ;;  %s31_s25 = int_to_ptr.vmem [resolvable:$true] %s30_s25 }
   0x4   :  { %p1989_p1 = scmp.lt.u32.totalorder %s1985_s28, %s2249_s1 }
   0x6   :  { %p1991_p2 = pnand %p1989_p1, %p1986_p0 }
   0x8   :  { %1994 = shalt.err (!%p1991_p2)
}
   0x9   :  { %s1995_s10 = scalar_lea.vmem %s31_s25, 4096  ;;  %p2000_p4 = scmp.lt.s32.totalorder %s31_s25, %s31_s25 }
   0xa   :  { %p1996_p3 = scmp.ne.s32.totalorder %s31_s25, %s1995_s10  ;;  %p2001_p5 = scmp.lt.s32.totalorder %s1995_s10, %s1995_s10 }
   0xc   :  { %p2002_p6 = por %p2001_p5, %p2000_p4 }
   0xe   :  { %p2003_p7 = pnand %p2002_p6, %p1996_p3 }
  0x10   :  { %2006 = shalt.err (!%p2003_p7)
}
  0x11   :  { %s2102_s11 = smov 256   ;;  %s2103_s12 = smov 16  }
  0x12   :  { %36 = dma.hbm_to_vmem [thread:$0]  %s2249_s1, 4096, %s31_s25, [#allocation6], %s2102_s11, %s2102_s11, %s2103_s12  }
  0x13   :  { %s2104_s15 = smov [#allocation8]   ;;  %s2007_s19 = scalar_lea.hbm %s2251_s3, 12288 }
  0x14   :  { %s52_s16 = sshll.u32 %s2104_s15, 4  ;;  %p2008_p8 = scmp.ne.s32.totalorder %s2251_s3, %s2007_s19  ;;  %s53_s16 = int_to_ptr.vmem [resolvable:$true] %s52_s16 }
  0x15   :  { %p2011_p9 = scmp.lt.u32.totalorder %s2007_s19, %s2251_s3 }
  0x17   :  { %p2013_p10 = pnand %p2011_p9, %p2008_p8 }
  0x19   :  { %2016 = shalt.err (!%p2013_p10)
}
  0x1a   :  { %s2017_s24 = scalar_lea.vmem %s53_s16, 12288  ;;  %p2022_p12 = scmp.lt.s32.totalorder %s53_s16, %s53_s16 }
  0x1b   :  { %p2018_p11 = scmp.ne.s32.totalorder %s53_s16, %s2017_s24  ;;  %p2023_p13 = scmp.lt.s32.totalorder %s2017_s24, %s2017_s24 }
  0x1d   :  { %p2024_p0 = por %p2023_p13, %p2022_p12 }
  0x1f   :  { %p2025_p1 = pnand %p2024_p0, %p2018_p11 }
  0x21   :  { %2028 = shalt.err (!%p2025_p1)
}
  0x22   :  { %s2105_s1 = smov 192   ;;  %s2106_s25 = smov 12  }
  0x23   :  { %58 = dma.hbm_to_vmem [thread:$0]  %s2251_s3, 12288, %s53_s16, [#allocation9], %s2105_s1, %s2105_s1, %s2106_s25  }
  0x24   :  { %s2107_s28 = smov [#allocation3]   ;;  %s2108_s30 = smov [#allocation7]  }
  0x25   :  { %s21_s29 = sshll.u32 %s2107_s28, 4  ;;  %s43_s8 = sshll.u32 %s2108_s30, 4  ;;  %s22_s29 = int_to_ptr.vmem [resolvable:$true] %s21_s29  ;;  %s44_s8 = int_to_ptr.vmem [resolvable:$true] %s43_s8 }
  0x26   :  { %s2029_s11 = scalar_lea.hbm %s2248_s0, 128 }
  0x27   :  { %p2030_p2 = scmp.ne.s32.totalorder %s2248_s0, %s2029_s11  ;;  %p2033_p3 = scmp.lt.u32.totalorder %s2029_s11, %s2248_s0 }
  0x29   :  { %p2035_p4 = pnand %p2033_p3, %p2030_p2 }
  0x2b   :  { %2038 = shalt.err (!%p2035_p4)
}
  0x2c   :  { %s2039_s3 = scalar_lea.vmem %s22_s29, 128  ;;  %p2044_p6 = scmp.lt.s32.totalorder %s22_s29, %s22_s29 }
  0x2d   :  { %p2040_p5 = scmp.ne.s32.totalorder %s22_s29, %s2039_s3  ;;  %p2045_p7 = scmp.lt.s32.totalorder %s2039_s3, %s2039_s3 }
  0x2f   :  { %p2046_p8 = por %p2045_p7, %p2044_p6 }
  0x31   :  { %p2047_p9 = pnand %p2046_p8, %p2040_p5 }
  0x33   :  { %2050 = shalt.err (!%p2047_p9)
}
  0x34   :  { %24 = dma.hbm_to_vmem [thread:$0]  %s2248_s0, 128, %s22_s29, [#allocation4]  }
  0x35   :  { %s2051_s20 = scalar_lea.hbm %s2250_s2, 64 }
  0x36   :  { %p2052_p10 = scmp.ne.s32.totalorder %s2250_s2, %s2051_s20  ;;  %p2055_p11 = scmp.lt.u32.totalorder %s2051_s20, %s2250_s2 }
  0x38   :  { %p2057_p12 = pnand %p2055_p11, %p2052_p10 }
  0x3a   :  { %2060 = shalt.err (!%p2057_p12)
}
  0x3b   :  { %s2061_s1 = scalar_lea.vmem %s44_s8, 64  ;;  %p2066_p0 = scmp.lt.s32.totalorder %s44_s8, %s44_s8 }
  0x3c   :  { %p2062_p13 = scmp.ne.s32.totalorder %s44_s8, %s2061_s1  ;;  %p2067_p1 = scmp.lt.s32.totalorder %s2061_s1, %s2061_s1 }
  0x3e   :  { %p2068_p2 = por %p2067_p1, %p2066_p0 }
  0x40   :  { %p2069_p3 = pnand %p2068_p2, %p2062_p13 }
  0x42   :  { %2072 = shalt.err (!%p2069_p3)
}
  0x43   :  { %46 = dma.hbm_to_vmem [thread:$0]  %s2250_s2, 64, %s44_s8, [#allocation6]  }
  0x44   :  { %s2109_s26 = smov [#allocation10]   ;;  %s2073_s30 = scalar_lea.hbm %s2253_s5, 3072 }
  0x45   :  { %s66_s27 = sshll.u32 %s2109_s26, 4  ;;  %p2074_p4 = scmp.ne.s32.totalorder %s2253_s5, %s2073_s30  ;;  %s67_s27 = int_to_ptr.vmem [resolvable:$true] %s66_s27 }
  0x46   :  { %p2077_p5 = scmp.lt.u32.totalorder %s2073_s30, %s2253_s5 }
  0x48   :  { %p2079_p6 = pnand %p2077_p5, %p2074_p4 }
  0x4a   :  { %2082 = shalt.err (!%p2079_p6)
}
  0x4b   :  { %s2083_s13 = scalar_lea.vmem %s67_s27, 3072  ;;  %p2088_p8 = scmp.lt.s32.totalorder %s67_s27, %s67_s27 }
  0x4c   :  { %p2084_p7 = scmp.ne.s32.totalorder %s67_s27, %s2083_s13  ;;  %p2089_p9 = scmp.lt.s32.totalorder %s2083_s13, %s2083_s13 }
  0x4e   :  { %p2090_p10 = por %p2089_p9, %p2088_p8 }
  0x50   :  { %p2091_p11 = pnand %p2090_p10, %p2084_p7 }
  0x52   :  { %2094 = shalt.err (!%p2091_p11)
}
  0x53   :  { %s2110_s2 = smov 64   ;;  %s2111_s8 = smov 4  }
  0x54   :  { %72 = dma.hbm_to_vmem [thread:$0]  %s2253_s5, 3072, %s67_s27, [#allocation9], %s2110_s2, %s2110_s2, %s2111_s8  }
  0x55   :  { %2095 = dma.done.wait [#allocation4], 128  }
  0x56   :  { %2096 = vsyncadd [#allocation4], 4294967168 }
  0x57   :  { %2097 = dma.done.wait [#allocation6], 4160  }
  0x58   :  { %2098 = vsyncadd [#allocation6], 4294963136 }
  0x59   :  { %2099 = dma.done.wait [#allocation9], 15360  }
  0x5a   :  { %2100 = vsyncadd [#allocation9], 4294951936  ;;  %v2112_v0 = vmov 0   ;;  %v1783_v1 = vld [vmem:[#allocation5 + $0x4] ss:$16 sps:$4 sm:$0xff]   ;;  %v92_v10 = vld [vmem:[#allocation3] sm:$0xff] }
  0x5b   :  { %91 = vst [vmem:[#allocation2] sm:$0xf] %v2112_v0  ;;  %345 = vmatprep.mubr.bf16.mxu0 %v2112_v0  ;;  %386 = vmatprep.mubr.bf16.mxu1 %v2112_v0  ;;  %v1785_v2 = vld [vmem:[#allocation5] ss:$16 sps:$4 sm:$0xff]   ;;  %v1786_v3 = vld [vmem:[#allocation5 + $0x24] ss:$16 sps:$4 sm:$0xff]   ;;  %v93_v11 = vpack.c.bf16 %v92_v10, %v92_v10 }
  0x5c   :  { %313 = vmatprep.subr.bf16.mxu0 %v1783_v1  ;;  %v1788_v4 = vld [vmem:[#allocation5 + $0x20] ss:$16 sps:$4 sm:$0xff]   ;;  %v1789_v5 = vld [vmem:[#allocation5 + $0x44] ss:$16 sps:$4 sm:$0xff]   ;;  %vm94_vm0 = vcmask 191488   ;;  %vm2114_vm1 = vmmov 0  }
  0x5d   :  { %314 = vmatpush1.bf16.msra.mxu0 %v1785_v2  ;;  %v1791_v6 = vld [vmem:[#allocation5 + $0x40] ss:$16 sps:$4 sm:$0xff]   ;;  %v1792_v7 = vld [vmem:[#allocation5 + $0x64] ss:$16 sps:$4 sm:$0xff]   ;;  %v1807_v12 = vld [vmem:[#allocation5 + $0xc] ss:$16 sps:$4 sm:$0xff]  }
  0x5e   :  { %315 = vmatprep.subr.bf16.mxu0 %v1786_v3  ;;  %v1794_v8 = vld [vmem:[#allocation5 + $0x60] ss:$16 sps:$4 sm:$0xff]   ;;  %v1795_v9 = vld [vmem:[#allocation5 + $0x84] ss:$16 sps:$4 sm:$0xff]   ;;  %v1809_v13 = vld [vmem:[#allocation5 + $0x8] ss:$16 sps:$4 sm:$0xff]   ;;  %354 = vmatprep.subr.bf16.mxu1 %v1807_v12 }
  0x5f   :  { %95 = vst.msk [vmem:[#allocation2] sm:$0xf] %vm94_vm0, %v93_v11  ;;  %v1810_v14 = vld [vmem:[#allocation5 + $0x2c] ss:$16 sps:$4 sm:$0xff]   ;;  %v1797_v15 = vld [vmem:[#allocation5 + $0x80] ss:$16 sps:$4 sm:$0xff]   ;;  %355 = vmatpush1.bf16.msra.mxu1 %v1809_v13 }
  0x60   :  { %v1812_v16 = vld [vmem:[#allocation5 + $0x28] ss:$16 sps:$4 sm:$0xff]   ;;  %356 = vmatprep.subr.bf16.mxu1 %v1810_v14  ;;  %v1813_v17 = vld [vmem:[#allocation5 + $0x4c] ss:$16 sps:$4 sm:$0xff]   ;;  %v1798_v18 = vld [vmem:[#allocation5 + $0xa4] ss:$16 sps:$4 sm:$0xff]  }
  0x61   :  { %316 = vmatpush1.bf16.msra.mxu0 %v1788_v4  ;;  %v1800_v19 = vld [vmem:[#allocation5 + $0xa0] ss:$16 sps:$4 sm:$0xff]   ;;  %v1815_v20 = vld [vmem:[#allocation5 + $0x48] ss:$16 sps:$4 sm:$0xff]   ;;  %v1816_v21 = vld [vmem:[#allocation5 + $0x6c] ss:$16 sps:$4 sm:$0xff]  }
  0x62   :  { %317 = vmatprep.subr.bf16.mxu0 %v1789_v5  ;;  %v1801_v22 = vld [vmem:[#allocation5 + $0xc4] ss:$16 sps:$4 sm:$0xff]   ;;  %v1803_v23 = vld [vmem:[#allocation5 + $0xc0] ss:$16 sps:$4 sm:$0xff]   ;;  %v1818_v24 = vld [vmem:[#allocation5 + $0x68] ss:$16 sps:$4 sm:$0xff]  }
  0x63   :  { %357 = vmatpush1.bf16.msra.mxu1 %v1812_v16  ;;  %v1819_v25 = vld [vmem:[#allocation5 + $0x8c] ss:$16 sps:$4 sm:$0xff]   ;;  %v1804_v26 = vld [vmem:[#allocation5 + $0xe4] ss:$16 sps:$4 sm:$0xff]   ;;  %v1806_v27 = vld [vmem:[#allocation5 + $0xe0] ss:$16 sps:$4 sm:$0xff]  }
  0x64   :  { %358 = vmatprep.subr.bf16.mxu1 %v1813_v17  ;;  %v1821_v28 = vld [vmem:[#allocation5 + $0x88] ss:$16 sps:$4 sm:$0xff]   ;;  %v1822_v29 = vld [vmem:[#allocation5 + $0xac] ss:$16 sps:$4 sm:$0xff]   ;;  %v1831_v34 = vld [vmem:[#allocation8] ss:$12 sps:$4 sm:$0xff]  }
  0x65   :  { %318 = vmatpush1.bf16.msra.mxu0 %v1791_v6  ;;  %v1833_v30 = vld [vmem:[#allocation8 + $0x4] ss:$12 sps:$4 sm:$0xff]   ;;  %v1825_v32 = vld [vmem:[#allocation5 + $0xcc] ss:$16 sps:$4 sm:$0xff]   ;;  %v1839_v39 = vld [vmem:[#allocation8 + $0x34] ss:$12 sps:$4 sm:$0xff]  }
  0x66   :  { %319 = vmatprep.subr.bf16.mxu0 %v1792_v7  ;;  %v1824_v31 = vld [vmem:[#allocation5 + $0xa8] ss:$16 sps:$4 sm:$0xff]   ;;  %v96_v33 = vld [vmem:[#allocation2] sm:$0xf]  ;;  %v1836_v35 = vld [vmem:[#allocation8 + $0x1c] ss:$12 sps:$4 sm:$0xff]  }
  0x67   :  { %359 = vmatpush1.bf16.msra.mxu1 %v1815_v20  ;;  %v1827_v36 = vld [vmem:[#allocation5 + $0xc8] ss:$16 sps:$4 sm:$0xff]   ;;  %v1828_v37 = vld [vmem:[#allocation5 + $0xec] ss:$16 sps:$4 sm:$0xff]   ;;  %v1837_v41 = vld [vmem:[#allocation8 + $0x30] ss:$12 sps:$4 sm:$0xff]  }
  0x68   :  { %360 = vmatprep.subr.bf16.mxu1 %v1816_v21  ;;  %v1834_v38 = vld [vmem:[#allocation8 + $0x18] ss:$12 sps:$4 sm:$0xff]   ;;  %v1858_v42 = vld [vmem:[#allocation8 + $0xc8] ss:$12 sps:$4 sm:$0xff]   ;;  %v1863_v46 = vld [vmem:[#allocation8 + $0xe0] ss:$12 sps:$4 sm:$0xff]  }
  0x69   :  { %320 = vmatpush1.bf16.msra.mxu0 %v1794_v8  ;;  %v1830_v40 = vld [vmem:[#allocation5 + $0xe8] ss:$16 sps:$4 sm:$0xff]   ;;  %v1842_v43 = vld [vmem:[#allocation8 + $0x4c] ss:$12 sps:$4 sm:$0xff]   ;;  %v1848_v51 = vld [vmem:[#allocation8 + $0x7c] ss:$12 sps:$4 sm:$0xff]  }
  0x6a   :  { %321 = vmatprep.subr.bf16.mxu0 %v1795_v9  ;;  %v1859_v44 = vld [vmem:[#allocation8 + $0x8] ss:$12 sps:$4 sm:$0xff]   ;;  %v1845_v47 = vld [vmem:[#allocation8 + $0x64] ss:$12 sps:$4 sm:$0xff]   ;;  %v1843_v48 = vld [vmem:[#allocation8 + $0x60] ss:$12 sps:$4 sm:$0xff]  }
  0x6b   :  { %361 = vmatpush1.bf16.msra.mxu1 %v1818_v24  ;;  %v1840_v45 = vld [vmem:[#allocation8 + $0x48] ss:$12 sps:$4 sm:$0xff]   ;;  %v1864_v49 = vld [vmem:[#allocation8 + $0x20] ss:$12 sps:$4 sm:$0xff]   ;;  %v1868_v50 = vld [vmem:[#allocation8 + $0xf8] ss:$12 sps:$4 sm:$0xff]  }
  0x6c   :  { %362 = vmatprep.subr.bf16.mxu1 %v1819_v25  ;;  %v1846_v52 = vld [vmem:[#allocation8 + $0x78] ss:$12 sps:$4 sm:$0xff]   ;;  %v1873_v54 = vld [vmem:[#allocation8 + $0x110] ss:$12 sps:$4 sm:$0xff]   ;;  %v1851_v55 = vld [vmem:[#allocation8 + $0x94] ss:$12 sps:$4 sm:$0xff]  }
  0x6d   :  { %322 = vmatpush1.bf16.msra.mxu0 %v1797_v15  ;;  %v1869_v53 = vld [vmem:[#allocation8 + $0x38] ss:$12 sps:$4 sm:$0xff]   ;;  %v1874_v56 = vld [vmem:[#allocation8 + $0x50] ss:$12 sps:$4 sm:$0xff]   ;;  %v1878_v58 = vld [vmem:[#allocation8 + $0x128] ss:$12 sps:$4 sm:$0xff]  }
  0x6e   :  { %323 = vmatprep.subr.bf16.mxu0 %v1798_v18  ;;  %v1849_v57 = vld [vmem:[#allocation8 + $0x90] ss:$12 sps:$4 sm:$0xff]   ;;  %v1854_v59 = vld [vmem:[#allocation8 + $0xac] ss:$12 sps:$4 sm:$0xff]   ;;  %v1879_v60 = vld [vmem:[#allocation8 + $0x68] ss:$12 sps:$4 sm:$0xff]  }
  0x6f   :  { %363 = vmatpush1.bf16.msra.mxu1 %v1821_v28  ;;  %v1852_v61 = vld [vmem:[#allocation8 + $0xa8] ss:$12 sps:$4 sm:$0xff]   ;;  %v1883_v62 = vld [vmem:[#allocation8 + $0x140] ss:$12 sps:$4 sm:$0xff]   ;;  %v1857_v63 = vld [vmem:[#allocation8 + $0xc4] ss:$12 sps:$4 sm:$0xff]  }
  0x70   :  { %364 = vmatprep.subr.bf16.mxu1 %v1822_v29  ;;  %v1884_v0 = vld [vmem:[#allocation8 + $0x80] ss:$12 sps:$4 sm:$0xff]   ;;  %v1862_v2 = vld [vmem:[#allocation8 + $0xdc] ss:$12 sps:$4 sm:$0xff]   ;;  %v1860_v3 = vld [vmem:[#allocation8 + $0xd8] ss:$12 sps:$4 sm:$0xff]  }
  0x71   :  { %324 = vmatpush1.bf16.msra.mxu0 %v1800_v19  ;;  %v1855_v1 = vld [vmem:[#allocation8 + $0xc0] ss:$12 sps:$4 sm:$0xff]   ;;  %v1865_v5 = vld [vmem:[#allocation8 + $0xf0] ss:$12 sps:$4 sm:$0xff]   ;;  %v1870_v7 = vld [vmem:[#allocation8 + $0x108] ss:$12 sps:$4 sm:$0xff]  }
  0x72   :  { %325 = vmatprep.subr.bf16.mxu0 %v1801_v22  ;;  %v1867_v4 = vld [vmem:[#allocation8 + $0xf4] ss:$12 sps:$4 sm:$0xff]   ;;  %v1872_v6 = vld [vmem:[#allocation8 + $0x10c] ss:$12 sps:$4 sm:$0xff]   ;;  %v1877_v8 = vld [vmem:[#allocation8 + $0x124] ss:$12 sps:$4 sm:$0xff]   ;;  %v133_v22 = vlaneseq }
  0x73   :  { %365 = vmatpush1.bf16.msra.mxu1 %v1824_v31  ;;  %v1875_v9 = vld [vmem:[#allocation8 + $0x120] ss:$12 sps:$4 sm:$0xff]   ;;  %v1882_v10 = vld [vmem:[#allocation8 + $0x13c] ss:$12 sps:$4 sm:$0xff]   ;;  %v1880_v11 = vld [vmem:[#allocation8 + $0x138] ss:$12 sps:$4 sm:$0xff]  }
  0x74   :  { %366 = vmatprep.subr.bf16.mxu1 %v1825_v32  ;;  %v1887_v12 = vld [vmem:[#allocation8 + $0x154] ss:$12 sps:$4 sm:$0xff]   ;;  %v1888_v13 = vld [vmem:[#allocation8 + $0x158] ss:$12 sps:$4 sm:$0xff]   ;;  %v1885_v14 = vld [vmem:[#allocation8 + $0x150] ss:$12 sps:$4 sm:$0xff]  }
  0x75   :  { %326 = vmatpush1.bf16.msra.mxu0 %v1803_v23  ;;  %v1889_v15 = vld [vmem:[#allocation8 + $0x98] ss:$12 sps:$4 sm:$0xff]   ;;  %v1893_v17 = vld [vmem:[#allocation8 + $0x170] ss:$12 sps:$4 sm:$0xff]   ;;  %v1890_v18 = vld [vmem:[#allocation8 + $0x168] ss:$12 sps:$4 sm:$0xff]  }
  0x76   :  { %327 = vmatprep.subr.bf16.mxu0 %v1804_v26  ;;  %v1892_v16 = vld [vmem:[#allocation8 + $0x16c] ss:$12 sps:$4 sm:$0xff]   ;;  %v1894_v19 = vld [vmem:[#allocation8 + $0xb0] ss:$12 sps:$4 sm:$0xff]   ;;  %v1898_v21 = vld [vmem:[#allocation8 + $0x248] ss:$12 sps:$4 sm:$0xff]  }
  0x77   :  { %367 = vmatpush1.bf16.msra.mxu1 %v1827_v36  ;;  %v1897_v20 = vld [vmem:[#allocation8 + $0x184] ss:$12 sps:$4 sm:$0xff]   ;;  %v2215_v23 = vshrl.u32 %v133_v22, 7  ;;  %v2218_v25 = vld [vmem:[#allocation7] sm:$0xf] }
  0x78   :  { %368 = vmatprep.subr.bf16.mxu1 %v1828_v37  ;;  %v1938_v22 = vld [vmem:[#allocation8 + $0x258] ss:$12 sps:$4 sm:$0xff]  }
  0x79   :  { %328 = vmatpush1.bf16.msra.mxu0 %v1806_v27  ;;  %v135_v24 = vsub.s32 0, %v2215_v23  ;;  %v139_v26 = vsub.s32 1, %v2215_v23  ;;  %v147_v37 = vsub.s32 3, %v2215_v23 }
  0x7a   :  { %1059 = vmatprep.subr.bf16.mxu0 %v1833_v30 }
  0x7b   :  { %369 = vmatpush1.bf16.msra.mxu1 %v1830_v40  ;;  %v136_v27 = vrot.slane %v2218_v25, %v135_v24  ;;  %v140_v28 = vrot.slane %v2218_v25, %v139_v26  ;;  %v1899_v40 = vld [vmem:[#allocation8 + $0x188] ss:$12 sps:$4 sm:$0xff]  }
  0x7c   :  { %346 = vmatmul.mubr.bf16.vlgmr.msra.gmra.mrb[0].mxu0 %v96_v33  ;;  %1668 = vmatprep.subr.bf16.mxu1 %v1858_v42  ;;  %v1902_v42 = vld [vmem:[#allocation8 + $0x19c] ss:$12 sps:$4 sm:$0xff]  }
  0x7d   :  { %1060 = vmatpush1.bf16.msra.mxu0 %v1831_v34 }
  0x7e   :  { %1061 = vmatprep.subr.bf16.mxu0 %v1836_v35  ;;  %387 = vmatmul.mubr.bf16.vlgmr.msra.gmra.mrb[0].mxu1 %v96_v33 }
  0x7f   :  { %1669 = vmatpush3.bf16.msra.mxu1 %v1859_v44  ;;  %v148_v44 = vrot.slane %v2218_v25, %v147_v37  ;;  %v1956_v37 = vld [vmem:[#allocation8 + $0x2e8] ss:$12 sps:$4 sm:$0xff]  }
  0x80   :  { %1670 = vmatprep.subr.bf16.mxu1 %v1863_v46  ;;  %v1904_v46 = vld [vmem:[#allocation8 + $0x1a0] ss:$12 sps:$4 sm:$0xff]  }
  0x81   :  { %1062 = vmatpush1.bf16.msra.mxu0 %v1834_v38 }
  0x82   :  { %1063 = vmatprep.subr.bf16.mxu0 %v1839_v39  ;;  %v1895_v39 = vld [vmem:[#allocation8 + $0x180] ss:$12 sps:$4 sm:$0xff]  }
  0x83   :  { %1671 = vmatpush3.bf16.msra.mxu1 %v1864_v49 }
  0x84   :  { %1672 = vmatprep.subr.bf16.mxu1 %v1868_v50 }
  0x85   :  { %1064 = vmatpush1.bf16.msra.mxu0 %v1837_v41 }
  0x86   :  { %1065 = vmatprep.subr.bf16.mxu0 %v1842_v43  ;;  %v1903_v43 = vld [vmem:[#allocation8 + $0x260] ss:$12 sps:$4 sm:$0xff]  }
  0x87   :  { %1673 = vmatpush3.bf16.msra.mxu1 %v1869_v53  ;;  %v1905_v53 = vld [vmem:[#allocation8 + $0x1b0] ss:$12 sps:$4 sm:$0xff]  }
  0x88   :  { %1674 = vmatprep.subr.bf16.mxu1 %v1873_v54  ;;  %v1909_v54 = vld [vmem:[#allocation8 + $0x1b8] ss:$12 sps:$4 sm:$0xff]  }
  0x89   :  { %1066 = vmatpush1.bf16.msra.mxu0 %v1840_v45  ;;  %v1900_v45 = vld [vmem:[#allocation8 + $0x198] ss:$12 sps:$4 sm:$0xff]  }
  0x8a   :  { %1067 = vmatprep.subr.bf16.mxu0 %v1845_v47  ;;  %v1907_v47 = vld [vmem:[#allocation8 + $0x1b4] ss:$12 sps:$4 sm:$0xff]  }
  0x8b   :  { %1675 = vmatpush3.bf16.msra.mxu1 %v1874_v56  ;;  %v1912_v56 = vld [vmem:[#allocation8 + $0x1cc] ss:$12 sps:$4 sm:$0xff]  }
  0x8c   :  { %1676 = vmatprep.subr.bf16.mxu1 %v1878_v58 }
  0x8d   :  { %1068 = vmatpush1.bf16.msra.mxu0 %v1843_v48  ;;  %v1908_v48 = vld [vmem:[#allocation8 + $0x278] ss:$12 sps:$4 sm:$0xff]  }
  0x8e   :  { %1069 = vmatprep.subr.bf16.mxu0 %v1848_v51 }
  0x8f   :  { %1677 = vmatpush3.bf16.msra.mxu1 %v1879_v60  ;;  %v1910_v60 = vld [vmem:[#allocation8 + $0x1c8] ss:$12 sps:$4 sm:$0xff]  }
  0x90   :  { %1678 = vmatprep.subr.bf16.mxu1 %v1883_v62  ;;  %v1917_v62 = vld [vmem:[#allocation8 + $0x1e4] ss:$12 sps:$4 sm:$0xff]  }
  0x91   :  { %1070 = vmatpush1.bf16.msra.mxu0 %v1846_v52 }
  0x92   :  { %1071 = vmatprep.subr.bf16.mxu0 %v1851_v55 }
  0x93   :  { %1679 = vmatpush3.bf16.msra.mxu1 %v1884_v0  ;;  %v143_v0 = vsub.s32 2, %v2215_v23  ;;  %v1977_v23 = vld [vmem:[#allocation10 + $0x90] sm:$0xff]  }
  0x94   :  { %1680 = vmatprep.subr.bf16.mxu1 %v1888_v13  ;;  %v1932_v13 = vld [vmem:[#allocation8 + $0x22c] ss:$12 sps:$4 sm:$0xff]  }
  0x95   :  { %1072 = vmatpush1.bf16.msra.mxu0 %v1849_v57  ;;  %v1913_v57 = vld [vmem:[#allocation8 + $0x290] ss:$12 sps:$4 sm:$0xff]  }
  0x96   :  { %1073 = vmatprep.subr.bf16.mxu0 %v1854_v59 }
  0x97   :  { %1681 = vmatpush3.bf16.msra.mxu1 %v1889_v15 }
  0x98   :  { %1682 = vmatprep.subr.bf16.mxu1 %v1893_v17  ;;  %v1934_v17 = vld [vmem:[#allocation8 + $0x230] ss:$12 sps:$4 sm:$0xff]  }
  0x99   :  { %1074 = vmatpush1.bf16.msra.mxu0 %v1852_v61  ;;  %v1914_v61 = vld [vmem:[#allocation8 + $0x1d0] ss:$12 sps:$4 sm:$0xff]  }
  0x9a   :  { %1075 = vmatprep.subr.bf16.mxu0 %v1857_v63  ;;  %v1918_v63 = vld [vmem:[#allocation8 + $0x2a8] ss:$12 sps:$4 sm:$0xff]  }
  0x9b   :  { %1683 = vmatpush3.bf16.msra.mxu1 %v1894_v19 }
  0x9c   :  { %1690 = vmatprep.subr.bf16.mxu1 %v1898_v21  ;;  %v1940_v21 = vld [vmem:[#allocation8 + $0x25c] ss:$12 sps:$4 sm:$0xff]  }
  0x9d   :  { %1076 = vmatpush1.bf16.msra.mxu0 %v1855_v1  ;;  %v1915_v1 = vld [vmem:[#allocation8 + $0x1e0] ss:$12 sps:$4 sm:$0xff]  }
  0x9e   :  { %1077 = vmatprep.subr.bf16.mxu0 %v1862_v2  ;;  %v1919_v2 = vld [vmem:[#allocation8 + $0x1e8] ss:$12 sps:$4 sm:$0xff]  }
  0xa1   :  { %1078 = vmatpush1.bf16.msra.mxu0 %v1860_v3  ;;  %v1922_v3 = vld [vmem:[#allocation8 + $0x1fc] ss:$12 sps:$4 sm:$0xff]  }
  0xa2   :  { %1079 = vmatprep.subr.bf16.mxu0 %v1867_v4  ;;  %v1923_v4 = vld [vmem:[#allocation8 + $0x2c0] ss:$12 sps:$4 sm:$0xff]  }
  0xa5   :  { %1080 = vmatpush1.bf16.msra.mxu0 %v1865_v5  ;;  %v144_v5 = vrot.slane %v2218_v25, %v143_v0  ;;  %v1943_v25 = vld [vmem:[#allocation8 + $0x274] ss:$12 sps:$4 sm:$0xff]  }
  0xa6   :  { %1081 = vmatprep.subr.bf16.mxu0 %v1872_v6  ;;  %v1920_v6 = vld [vmem:[#allocation8 + $0x1f8] ss:$12 sps:$4 sm:$0xff]  }
  0xa9   :  { %1082 = vmatpush1.bf16.msra.mxu0 %v1870_v7  ;;  %v1924_v7 = vld [vmem:[#allocation8 + $0x200] ss:$12 sps:$4 sm:$0xff]  }
  0xaa   :  { %1083 = vmatprep.subr.bf16.mxu0 %v1877_v8  ;;  %v1927_v8 = vld [vmem:[#allocation8 + $0x214] ss:$12 sps:$4 sm:$0xff]  }
  0xad   :  { %1084 = vmatpush1.bf16.msra.mxu0 %v1875_v9  ;;  %v1928_v9 = vld [vmem:[#allocation8 + $0x2d8] ss:$12 sps:$4 sm:$0xff]  }
  0xae   :  { %1085 = vmatprep.subr.bf16.mxu0 %v1882_v10 }
  0xb1   :  { %1086 = vmatpush1.bf16.msra.mxu0 %v1880_v11  ;;  %v1925_v11 = vld [vmem:[#allocation8 + $0x210] ss:$12 sps:$4 sm:$0xff]  }
  0xb2   :  { %1087 = vmatprep.subr.bf16.mxu0 %v1887_v12  ;;  %v1929_v12 = vld [vmem:[#allocation8 + $0x218] ss:$12 sps:$4 sm:$0xff]  }
  0xb5   :  { %1088 = vmatpush1.bf16.msra.mxu0 %v1885_v14  ;;  %v1933_v14 = vld [vmem:[#allocation8 + $0x2f0] ss:$12 sps:$4 sm:$0xff]  }
  0xb6   :  { %1089 = vmatprep.subr.bf16.mxu0 %v1892_v16  ;;  %v1930_v16 = vld [vmem:[#allocation8 + $0x228] ss:$12 sps:$4 sm:$0xff]  }
  0xb9   :  { %1090 = vmatpush1.bf16.msra.mxu0 %v1890_v18  ;;  %v1937_v18 = vld [vmem:[#allocation8 + $0x244] ss:$12 sps:$4 sm:$0xff]  }
  0xba   :  { %1100 = vmatprep.subr.bf16.mxu0 %v1897_v20  ;;  %v1935_v20 = vld [vmem:[#allocation8 + $0x240] ss:$12 sps:$4 sm:$0xff]  }
 0x14f   :  { %v347_v29 = vpop.f32.mrb[0].mxu0 }
 0x150   :  { %v348_v30 = vadd.f32 %v347_v29, %v136_v27  ;;  %v349_v31 = vpop.f32.mrb[1].mxu0  ;;  %v1941_v27 = vld [vmem:[#allocation8 + $0x270] ss:$12 sps:$4 sm:$0xff]   ;;  %v1944_v29 = vld [vmem:[#allocation8 + $0x288] ss:$12 sps:$4 sm:$0xff]  }
 0x151   :  { %v350_v32 = vadd.f32 %v349_v31, %v140_v28  ;;  %v351_v33 = vpop.f32.mrb[2].mxu0  ;;  %v388_v49 = vpop.f32.mrb[0].mxu1  ;;  %v1946_v28 = vld [vmem:[#allocation8 + $0x28c] ss:$12 sps:$4 sm:$0xff]  }
 0x152   :  { %v395_v34 = vmax.f32 %v348_v30, 0.0  ;;  %v352_v35 = vpop.f32.mrb[3].mxu0  ;;  %v390_v50 = vpop.f32.mrb[1].mxu1  ;;  %v389_v10 = vadd.f32 %v388_v49, %v144_v5  ;;  %v1949_v30 = vld [vmem:[#allocation8 + $0x2a4] ss:$12 sps:$4 sm:$0xff]   ;;  %v1970_v49 = vld [vmem:[#allocation10 + $0x28] sm:$0xff]  }
 0x153   :  { %v396_v36 = vmax.f32 %v350_v32, 0.0  ;;  %v391_v51 = vadd.f32 %v390_v50, %v148_v44  ;;  %v392_v52 = vpop.f32.mrb[2].mxu1  ;;  %v1947_v31 = vld [vmem:[#allocation8 + $0x2a0] ss:$12 sps:$4 sm:$0xff]   ;;  %v1952_v32 = vld [vmem:[#allocation8 + $0x2bc] ss:$12 sps:$4 sm:$0xff]  }
 0x154   :  { %v399_v41 = vpack.c.bf16 %v395_v34, %v395_v34  ;;  %v393_v55 = vpop.f32.mrb[3].mxu1  ;;  %v397_v15 = vmax.f32 %v389_v10, 0.0  ;;  %v1950_v33 = vld [vmem:[#allocation8 + $0x2b8] ss:$12 sps:$4 sm:$0xff]   ;;  %v1955_v34 = vld [vmem:[#allocation8 + $0x2d4] ss:$12 sps:$4 sm:$0xff]  }
 0x155   :  { %v400_v38 = vpack.c.bf16 %v396_v36, %v396_v36  ;;  %v398_v58 = vmax.f32 %v391_v51, 0.0  ;;  %v1953_v35 = vld [vmem:[#allocation8 + $0x2d0] ss:$12 sps:$4 sm:$0xff]   ;;  %v1958_v36 = vld [vmem:[#allocation8 + $0x2ec] ss:$12 sps:$4 sm:$0xff]  }
 0x156   :  { %v401_v19 = vpack.c.bf16 %v397_v15, %v397_v15  ;;  %v1965_v44 = vld [vmem:[#allocation10 + $0x58] sm:$0xff]   ;;  %v1971_v50 = vld [vmem:[#allocation10 + $0x70] sm:$0xff]  }
 0x157   :  { %1091 = vmatprep.mubr.bf16.mxu0 %v400_v38  ;;  %1173 = vmatprep.mubr.bf16.mxu1 %v400_v38  ;;  %v402_v59 = vpack.c.bf16 %v398_v58, %v398_v58  ;;  %v1959_v38 = vld [vmem:[#allocation10 + $0x40] sm:$0xff]   ;;  %v1972_v51 = vld [vmem:[#allocation10 + $0x30] sm:$0xff]   ;;  %v1973_v52 = vld [vmem:[#allocation10 + $0x78] sm:$0xff]  }
 0x158   :  { %1092 = vmatmul.mubr.bf16.vlgmr.msra.gmra.mrb[4].mxu0 %v399_v41  ;;  %1174 = vmatmul.mubr.bf16.vlgmr.msra.gmra.mrb[4].mxu1 %v399_v41  ;;  %v1962_v41 = vld [vmem:[#allocation10 + $0x8] sm:$0xff]  }
 0x159   :  { %1101 = vmatpush1.bf16.msra.mxu0 %v1895_v39  ;;  %1691 = vmatpush3.bf16.msra.mxu1 %v1899_v40  ;;  %v1960_v39 = vld [vmem:[#allocation10] sm:$0xff]   ;;  %v1961_v40 = vld [vmem:[#allocation10 + $0x48] sm:$0xff]  }
 0x15a   :  { %1102 = vmatprep.subr.bf16.mxu0 %v1902_v42  ;;  %1692 = vmatprep.subr.bf16.mxu1 %v1903_v43  ;;  %v1963_v42 = vld [vmem:[#allocation10 + $0x50] sm:$0xff]  }
 0x15b   :  { %1213 = vmatprep.mubr.bf16.mxu1 %v402_v59  ;;  %1132 = vmatprep.mubr.bf16.mxu0 %v402_v59  ;;  %v1964_v43 = vld [vmem:[#allocation10 + $0x10] sm:$0xff]  }
 0x15d   :  { %1103 = vmatpush1.bf16.msra.mxu0 %v1900_v45  ;;  %1693 = vmatpush3.bf16.msra.mxu1 %v1904_v46  ;;  %v1966_v45 = vld [vmem:[#allocation10 + $0x18] sm:$0xff]   ;;  %v1967_v46 = vld [vmem:[#allocation10 + $0x60] sm:$0xff]  }
 0x15e   :  { %1104 = vmatprep.subr.bf16.mxu0 %v1907_v47  ;;  %1694 = vmatprep.subr.bf16.mxu1 %v1908_v48  ;;  %v1968_v47 = vld [vmem:[#allocation10 + $0x20] sm:$0xff]   ;;  %v1969_v48 = vld [vmem:[#allocation10 + $0x68] sm:$0xff]  }
 0x161   :  { %1105 = vmatpush1.bf16.msra.mxu0 %v1905_v53  ;;  %1695 = vmatpush3.bf16.msra.mxu1 %v1909_v54  ;;  %v1974_v53 = vld [vmem:[#allocation10 + $0x38] sm:$0xff]   ;;  %v2113_v54 = vmov 0.0  }
 0x162   :  { %1106 = vmatprep.subr.bf16.mxu0 %v1912_v56  ;;  %1696 = vmatprep.subr.bf16.mxu1 %v1913_v57 }
 0x165   :  { %1107 = vmatpush1.bf16.msra.mxu0 %v1910_v60  ;;  %1697 = vmatpush3.bf16.msra.mxu1 %v1914_v61  ;;  %v98_v60 = vld [vmem:[%s2252_s4] sm:$0x7] }
 0x166   :  { %1108 = vmatprep.subr.bf16.mxu0 %v1917_v62  ;;  %1698 = vmatprep.subr.bf16.mxu1 %v1918_v63  ;;  %v543_v61 = vrot.slane %v98_v60, %v143_v0 }
 0x169   :  { %1109 = vmatpush1.bf16.msra.mxu0 %v1915_v1  ;;  %1699 = vmatpush3.bf16.msra.mxu1 %v1919_v2 }
 0x16a   :  { %1110 = vmatprep.subr.bf16.mxu0 %v1922_v3  ;;  %1700 = vmatprep.subr.bf16.mxu1 %v1923_v4 }
 0x16d   :  { %1111 = vmatpush1.bf16.msra.mxu0 %v1920_v6  ;;  %1701 = vmatpush3.bf16.msra.mxu1 %v1924_v7  ;;  %v535_v6 = vrot.slane %v98_v60, %v135_v24  ;;  %v539_v7 = vrot.slane %v98_v60, %v139_v26  ;;  %v1978_v24 = vld [vmem:[#allocation10 + $0x98] sm:$0xff]   ;;  %v1979_v26 = vld [vmem:[#allocation10 + $0xa0] sm:$0xff]  }
 0x16e   :  { %1112 = vmatprep.subr.bf16.mxu0 %v1927_v8  ;;  %1702 = vmatprep.subr.bf16.mxu1 %v1928_v9 }
 0x171   :  { %1113 = vmatpush1.bf16.msra.mxu0 %v1925_v11  ;;  %1703 = vmatpush3.bf16.msra.mxu1 %v1929_v12 }
 0x172   :  { %1114 = vmatprep.subr.bf16.mxu0 %v1932_v13  ;;  %1704 = vmatprep.subr.bf16.mxu1 %v1933_v14 }
 0x175   :  { %1115 = vmatpush1.bf16.msra.mxu0 %v1930_v16  ;;  %1705 = vmatpush3.bf16.msra.mxu1 %v1934_v17  ;;  %v1975_v16 = vld [vmem:[#allocation10 + $0x80] sm:$0xff]  }
 0x176   :  { %1116 = vmatprep.subr.bf16.mxu0 %v1937_v18  ;;  %1712 = vmatprep.subr.bf16.mxu1 %v1959_v38  ;;  %v1976_v18 = vld [vmem:[#allocation10 + $0x88] sm:$0xff]  }
 0x178   :  { %1214 = vmatmul.mubr.bf16.vlgmr.msra.gmra.mrb[8].mxu1 %v401_v19 }
 0x179   :  { %1117 = vmatpush1.bf16.msra.mxu0 %v1935_v20  ;;  %1713 = vmatpush3.bf16.msra.mxu1 %v1960_v39  ;;  %v1981_v20 = vld [vmem:[#allocation10 + $0xb0] sm:$0xff]  }
 0x17a   :  { %1118 = vmatprep.subr.bf16.mxu0 %v1940_v21  ;;  %1714 = vmatprep.subr.bf16.mxu1 %v1961_v40  ;;  %v1982_v21 = vld [vmem:[#allocation10 + $0xb8] sm:$0xff]  }
 0x17d   :  { %1119 = vmatpush1.bf16.msra.mxu0 %v1938_v22  ;;  %1715 = vmatpush3.bf16.msra.mxu1 %v1962_v41 }
 0x17e   :  { %1120 = vmatprep.subr.bf16.mxu0 %v1943_v25  ;;  %1716 = vmatprep.subr.bf16.mxu1 %v1963_v42 }
 0x181   :  { %1121 = vmatpush1.bf16.msra.mxu0 %v1941_v27  ;;  %1717 = vmatpush3.bf16.msra.mxu1 %v1964_v43 }
 0x182   :  { %1122 = vmatprep.subr.bf16.mxu0 %v1946_v28  ;;  %1718 = vmatprep.subr.bf16.mxu1 %v1965_v44 }
 0x185   :  { %1123 = vmatpush1.bf16.msra.mxu0 %v1944_v29  ;;  %1719 = vmatpush3.bf16.msra.mxu1 %v1966_v45 }
 0x186   :  { %1124 = vmatprep.subr.bf16.mxu0 %v1949_v30  ;;  %1720 = vmatprep.subr.bf16.mxu1 %v1967_v46 }
 0x189   :  { %1125 = vmatpush1.bf16.msra.mxu0 %v1947_v31  ;;  %1721 = vmatpush3.bf16.msra.mxu1 %v1968_v47 }
 0x18a   :  { %1126 = vmatprep.subr.bf16.mxu0 %v1952_v32  ;;  %1722 = vmatprep.subr.bf16.mxu1 %v1969_v48  ;;  %v1643_v32 = vld [vmem:[%s2254_s6] ss:$0 sm:$0xff] }
 0x18d   :  { %1127 = vmatpush1.bf16.msra.mxu0 %v1950_v33  ;;  %1723 = vmatpush3.bf16.msra.mxu1 %v1970_v49 }
 0x18e   :  { %1128 = vmatprep.subr.bf16.mxu0 %v1955_v34  ;;  %1724 = vmatprep.subr.bf16.mxu1 %v1971_v50 }
 0x191   :  { %1129 = vmatpush1.bf16.msra.mxu0 %v1953_v35  ;;  %1725 = vmatpush3.bf16.msra.mxu1 %v1972_v51 }
 0x192   :  { %1130 = vmatprep.subr.bf16.mxu0 %v1958_v36  ;;  %1726 = vmatprep.subr.bf16.mxu1 %v1973_v52 }
 0x195   :  { %1131 = vmatpush1.bf16.msra.mxu0 %v1956_v37  ;;  %1727 = vmatpush3.bf16.msra.mxu1 %v1974_v53 }
 0x196   :  { %1743 = vmatprep.subr.bf16.mxu1 %v2113_v54 }
 0x198   :  { %1133 = vmatmul.mubr.bf16.vlgmr.msra.gmra.mrb[4].mxu0 %v401_v19  ;;  %v1980_v19 = vld [vmem:[#allocation10 + $0xa8] sm:$0xff]  }
 0x22b   :  { %v1684_v55 = vpop.f32.mrb[4].mxu1 }
 0x22c   :  { %v1685_v56 = vpop.f32.mrb[5].mxu1 }
 0x22d   :  { %v1686_v57 = vadd.f32 %v1685_v56, %v1684_v55  ;;  %v1687_v58 = vpop.f32.mrb[6].mxu1 }
 0x22e   :  { %v1688_v59 = vpop.f32.mrb[7].mxu1 }
 0x22f   :  { %v1176_v1 = vadd.f32 %v1686_v57, %v543_v61 }
 0x24b   :  { %v1706_v62 = vpop.f32.mrb[8].mxu1 }
 0x24c   :  { %v1707_v63 = vpop.f32.mrb[9].mxu1 }
 0x24d   :  { %v1708_v2 = vadd.f32 %v1707_v63, %v1706_v62  ;;  %v1709_v3 = vpop.f32.mrb[10].mxu1 }
 0x24e   :  { %v1710_v4 = vpop.f32.mrb[11].mxu1 }
 0x24f   :  { %v1216_v5 = vadd.f32 %v1708_v2, %v1176_v1 }
 0x251   :  { %v1223_v22 = vmax.f32 %v1216_v5, 0.0 }
 0x253   :  { %v1226_v25 = vpack.c.bf16 %v1223_v22, %v1223_v22 }
 0x26b   :  { %v1134_v8 = vpop.f32.mrb[4].mxu0 }
 0x26c   :  { %v1763_v9 = vadd.f32 %v1134_v8, %v535_v6  ;;  %v1136_v10 = vpop.f32.mrb[5].mxu0 }
 0x26d   :  { %v1764_v11 = vadd.f32 %v1136_v10, %v539_v7  ;;  %v1138_v12 = vpop.f32.mrb[6].mxu0 }
 0x26e   :  { %v1221_v13 = vmax.f32 %v1763_v9, 0.0  ;;  %v1139_v0 = vpop.f32.mrb[7].mxu0 }
 0x26f   :  { %v1222_v14 = vmax.f32 %v1764_v11, 0.0 }
 0x270   :  { %v1224_v17 = vpack.c.bf16 %v1221_v13, %v1221_v13 }
 0x271   :  { %v1225_v15 = vpack.c.bf16 %v1222_v14, %v1222_v14 }
 0x273   :  { %1457 = vmatprep.mubr.bf16.mxu1 %v1225_v15 }
 0x274   :  { %1458 = vmatmul.mubr.bf16.vlgmr.msra.gmra.mrb[12].mxu1 %v1224_v17 }
 0x275   :  { %1744 = vmatpush3.bf16.msra.mxu1 %v1975_v16  ;;  %1759 = vmatprep.mubr.msk.bf16.mxu1 %vm2114_vm1, %v2113_v54 }
 0x276   :  { %1745 = vmatprep.subr.bf16.mxu1 %v2113_v54 }
 0x279   :  { %1746 = vmatpush3.bf16.msra.mxu1 %v1976_v18 }
 0x27a   :  { %1747 = vmatprep.subr.bf16.mxu1 %v2113_v54 }
 0x27d   :  { %1748 = vmatpush3.bf16.msra.mxu1 %v1977_v23 }
 0x27e   :  { %1749 = vmatprep.subr.bf16.mxu1 %v2113_v54 }
 0x281   :  { %1750 = vmatpush3.bf16.msra.mxu1 %v1978_v24 }
 0x282   :  { %1751 = vmatprep.subr.bf16.mxu1 %v2113_v54 }
 0x285   :  { %1752 = vmatpush3.bf16.msra.mxu1 %v1979_v26 }
 0x286   :  { %1753 = vmatprep.subr.bf16.mxu1 %v2113_v54 }
 0x289   :  { %1754 = vmatpush3.bf16.msra.mxu1 %v1980_v19 }
 0x28a   :  { %1755 = vmatprep.subr.bf16.mxu1 %v2113_v54 }
 0x28d   :  { %1756 = vmatpush3.bf16.msra.mxu1 %v1981_v20 }
 0x28e   :  { %1757 = vmatprep.subr.bf16.mxu1 %v2113_v54 }
 0x291   :  { %1758 = vmatpush3.bf16.msra.mxu1 %v1982_v21 }
 0x294   :  { %1760 = vmatmul.mubr.bf16.vlgmr.msra.gmra.mrb[16].mxu1 %v1226_v25 }
 0x347   :  { %v1728_v27 = vpop.f32.mrb[12].mxu1 }
 0x348   :  { %v1729_v28 = vpop.f32.mrb[13].mxu1 }
 0x349   :  { %v1730_v29 = vadd.f32 %v1729_v28, %v1728_v27  ;;  %v1731_v30 = vpop.f32.mrb[14].mxu1 }
 0x34a   :  { %v1732_v31 = vpop.f32.mrb[15].mxu1 }
 0x34b   :  { %v1460_v33 = vadd.f32 %v1730_v29, %v1643_v32 }
 0x367   :  { %v1499_v34 = vpop.f32.mrb[16].mxu1 }
 0x368   :  { %v1500_v35 = vadd.f32 %v1499_v34, %v1460_v33  ;;  %v1761_v36 = vpop.f32.mrb[17].mxu1 }
 0x369   :  { %v1502_v37 = vpop.f32.mrb[18].mxu1 }
 0x36a   :  { %1983 = vtanh.f32 %v1500_v35  ;;  %v1762_v38 = vpop.f32.mrb[19].mxu1 }
 0x374   :  { %v1984_v39 = vpop.eup %1983 }
 0x375   :  { %v1506_v40 = vpack.c.bf16 %v1984_v39, %v1984_v39 }
 0x377   :  { %1507 = vst [vmem:[%s2255_s7] sm:$0xf] %v1506_v40 }
 0x378   :  { %1512 = vsyncpa [#allocation4], 1 }
 0x379   :  { %1513 = vsyncpa [#allocation6], 1 }
 0x37a   :  { %1514 = vsyncpa [#allocation9], 1 }

</bundles_post_ra>
